<compile_context>
chip_gen: v7x
topology: tpu7x:2x2x1
jax: 0.10.0
libtpu: 0.0.40
codegen_flags: <defaults>
</compile_context>

<pallas_src>
import functools

import jax
import jax.numpy as jnp
from jax.experimental import pallas as pl
from jax.experimental.pallas import tpu as pltpu


def _cdiv(a, b):
    return -(-a // b)


def _cbam_kernel(k, H, W, x_ref, w1_ref, b1_ref, w2_ref, b2_ref, cw_ref,
                 cb_ref, mask_ref, o_ref):
    """Processes TB batch elements.

    x_ref    : (TB, C, HWp) VMEM  (lane-dense flattened+padded spatial)
    w1_ref   : (C, mid)     VMEM  (Linear(C->mid).weight.T)
    b1_ref   : (1, mid)     VMEM
    w2_ref   : (mid, C)     VMEM  (Linear(mid->C).weight.T)
    b2_ref   : (1, C)       VMEM
    cw_ref   : (2*k*k,)     SMEM  (Conv2d(2->1,k).weight, OIHW flattened;
                                   channel 0 = max-pool, 1 = avg-pool)
    cb_ref   : (1,)         SMEM
    mask_ref : (k*k, HWp)   VMEM  precomputed border-validity masks (f32)
    o_ref    : (TB, C, HWp) VMEM
    """
    p = (k - 1) // 2
    HW = H * W
    TB, C, HWp = x_ref.shape
    mid = w1_ref.shape[1]
    n2 = 2 * TB

    # ---- channel attention: global avg / max pool over spatial -> (TB, C) --
    # Pool straight off the native-dtype block with f32 accumulation; no full
    # f32 copy of x is materialized here.
    x_nat = x_ref[...]                                        # (TB, C, HWp)
    avg_c = jnp.sum(x_nat, axis=-1, dtype=jnp.float32) * (1.0 / HW)
    if HWp > HW:
        lane = jax.lax.broadcasted_iota(jnp.int32, (1, 1, HWp), 2)
        neg = jnp.array(-jnp.inf, dtype=x_nat.dtype)
        max_c = jnp.max(jnp.where(lane < HW, x_nat, neg),
                        axis=-1).astype(jnp.float32)
    else:
        max_c = jnp.max(x_nat, axis=-1).astype(jnp.float32)

    # Fused bottleneck MLP on the stacked avg/max rows.
    pools = jnp.concatenate([avg_c, max_c], axis=0)           # (2*TB, C)
    if C <= 16 and mid <= 16:
        # Tiny K/N would pad the MXU to its minimum tile (<3% utilization);
        # do the matmuls as VPU rank-1 updates instead.
        h1 = jnp.broadcast_to(b1_ref[...].astype(jnp.float32), (n2, mid))
        for c in range(C):
            h1 = h1 + pools[:, c:c + 1] * w1_ref[c:c + 1, :].astype(jnp.float32)
        h1 = jnp.maximum(h1, 0.0)
        h2 = jnp.broadcast_to(b2_ref[...].astype(jnp.float32), (n2, C))
        for m in range(mid):
            h2 = h2 + h1[:, m:m + 1] * w2_ref[m:m + 1, :].astype(jnp.float32)
    else:
        h1 = jnp.dot(pools, w1_ref[...],
                     preferred_element_type=jnp.float32) + b1_ref[...]
        h1 = jnp.maximum(h1, 0.0)
        h2 = jnp.dot(h1, w2_ref[...],
                     preferred_element_type=jnp.float32) + b2_ref[...]
    chan_att = jax.nn.sigmoid(h2[:TB] + h2[TB:])              # (TB, C)

    # Only full-size f32 temporary in the kernel.
    fp = x_nat.astype(jnp.float32) * chan_att[:, :, None]     # (TB, C, HWp)

    # ---- spatial attention: channel-wise max / mean, stacked -> (2*TB, HWp)
    sp_max = jnp.max(fp, axis=1)
    sp_avg = jnp.sum(fp, axis=1) * (1.0 / C)
    sp = jnp.concatenate([sp_max, sp_avg], axis=0)            # (2*TB, HWp)

    # Per-row conv weight selector: first TB rows use the max-pool channel
    # weight, last TB rows the avg-pool channel weight (hoisted out of loop).
    row = jax.lax.broadcasted_iota(jnp.int32, (n2, 1), 0)
    is_max_half = row < TB

    # ---- Conv2d(2 -> 1, kernel k, 'same' zero padding): one roll per tap ---
    acc = jnp.zeros((n2, HWp), jnp.float32)
    for dh in range(k):
        for dw in range(k):
            sh = dh - p
            sw = dw - p
            tap = dh * k + dw
            w_max = cw_ref[0 * k * k + tap]                   # SMEM scalars
            w_avg = cw_ref[1 * k * k + tap]
            wcol = jnp.where(is_max_half, w_max, w_avg)       # (2*TB, 1)
            mrow = mask_ref[tap:tap + 1, :]                   # (1, HWp)
            if sh == 0 and sw == 0:
                acc = acc + wcol * (mrow * sp)
            else:
                shift = (-(sh * W + sw)) % HWp
                acc = acc + wcol * (mrow * pltpu.roll(sp, shift=shift, axis=1))

    conv = acc[:TB] + acc[TB:] + cb_ref[0]                    # (TB, HWp)
    spat_att = jax.nn.sigmoid(conv)

    o_ref[...] = (fp * spat_att[:, None, :]).astype(o_ref.dtype)


def _conv_border_masks(ks, H, W, HWp):
    """(ks*ks, HWp) f32 masks: 1 where the tap's source pixel is inside the
    H x W image (and the target lane is a real spatial position)."""
    p = (ks - 1) // 2
    HW = H * W
    t = jnp.arange(HWp)
    hh = t // W
    ww = t % W
    rows = []
    for dh in range(ks):
        for dw in range(ks):
            sh, sw = dh - p, dw - p
            valid = ((t < HW) & (hh + sh >= 0) & (hh + sh < H) &
                     (ww + sw >= 0) & (ww + sw < W))
            rows.append(valid.astype(jnp.float32))
    return jnp.stack(rows, axis=0)


def _pick_batch_block(B, C, HWp, itemsize,
                      vmem_budget=40 << 20, min_block=1 << 20):
    # Approximate per-batch-element VMEM footprint of one grid step:
    #   double-buffered input + output blocks : 4 * C * HWp * itemsize
    #   fp (the single full-size f32 temp)    : C * HWp * 4
    #   stacked spatial maps / conv acc       : ~6 * HWp * 4
    per_b = 4 * C * HWp * itemsize + C * HWp * 4 + 6 * HWp * 4
    tb = max(1, min(B, vmem_budget // max(per_b, 1)))
    # Prefer >= 2 (even) large grid steps so v7x's two TensorCores are both
    # busy — but never split small workloads (single-TC v5e/v6e would only
    # pay extra per-step overhead for smaller blocks).
    if tb >= B and B > 1:
        half = _cdiv(B, 2)
        if half * per_b >= min_block:
            tb = half
    nb = _cdiv(B, tb)
    if nb > 1 and nb % 2 == 1 and tb > 1:
        tb_even = _cdiv(B, nb + 1)
        if tb_even >= 1 and tb_even * per_b >= min_block:
            tb = tb_even
            nb = _cdiv(B, tb)
    return tb, nb


def cbam_pallas(x, w1t, b1, w2t, b2r, cw, cb, kernel_size):
    B, C, H, W = x.shape
    mid = w1t.shape[1]
    ks = kernel_size
    HW = H * W
    HWp = _cdiv(HW, 128) * 128            # lane-dense last dim

    x_flat = x.reshape(B, C, HW)
    if HWp != HW:
        x_flat = jnp.pad(x_flat, ((0, 0), (0, 0), (0, HWp - HW)))

    masks = _conv_border_masks(ks, H, W, HWp)          # (ks*ks, HWp) f32

    tb, nb = _pick_batch_block(B, C, HWp, x.dtype.itemsize)

    # Mem-bound cost hint for XLA's scheduler.
    io_bytes = 2 * B * C * HWp * x.dtype.itemsize
    param_bytes = 4 * (w1t.size + b1.size + w2t.size + b2r.size +
                       cw.size + cb.size + masks.size)
    flops = B * C * HW * 6 + B * HW * 4 * ks * ks + 4 * B * C * mid
    cost = pl.CostEstimate(flops=int(flops),
                           transcendentals=int(B * (C + HW)),
                           bytes_accessed=int(io_bytes + param_bytes))

    kern = functools.partial(_cbam_kernel, ks, H, W)
    out = pl.pallas_call(
        kern,
        out_shape=jax.ShapeDtypeStruct((B, C, HWp), x.dtype),
        grid_spec=pltpu.PrefetchScalarGridSpec(
            num_scalar_prefetch=0,
            grid=(nb,),
            in_specs=[
                pl.BlockSpec((tb, C, HWp), lambda b: (b, 0, 0)),
                pl.BlockSpec((C, mid), lambda b: (0, 0)),
                pl.BlockSpec((1, mid), lambda b: (0, 0)),
                pl.BlockSpec((mid, C), lambda b: (0, 0)),
                pl.BlockSpec((1, C), lambda b: (0, 0)),
                pl.BlockSpec(memory_space=pltpu.MemorySpace.SMEM),
                pl.BlockSpec(memory_space=pltpu.MemorySpace.SMEM),
                pl.BlockSpec((ks * ks, HWp), lambda b: (0, 0)),
            ],
            out_specs=pl.BlockSpec((tb, C, HWp), lambda b: (b, 0, 0)),
        ),
        compiler_params=pltpu.CompilerParams(
            dimension_semantics=("parallel",),
            vmem_limit_bytes=48 * 1024 * 1024),
        cost_estimate=cost,
    )(x_flat, w1t, b1, w2t, b2r, cw, cb, masks)
    return out[:, :, :HW].reshape(B, C, H, W)


def cbam_ref(x, w1t, b1, w2t, b2r, cw, cb, ks):
    """Pure-JAX reference matching the PyTorch CBAM forward (status='cbam')."""
    p = (ks - 1) // 2
    avg = x.mean(axis=(2, 3))                       # (B, C)
    mx = x.max(axis=(2, 3))                         # (B, C)

    def bott(v):
        h = jax.nn.relu(v @ w1t + b1)
        return h @ w2t + b2r

    chan = jax.nn.sigmoid(bott(avg) + bott(mx))     # (B, C)
    fp = x * chan[:, :, None, None]
    sp_max = fp.max(axis=1, keepdims=True)
    sp_avg = fp.mean(axis=1, keepdims=True)
    pool = jnp.concatenate([sp_max, sp_avg], axis=1)
    conv = jax.lax.conv_general_dilated(
        pool, cw.reshape(1, 2, ks, ks), window_strides=(1, 1),
        padding=[(p, p), (p, p)],
        dimension_numbers=("NCHW", "OIHW", "NCHW")) + cb[0]
    att = jax.nn.sigmoid(conv)
    return fp * att


if __name__ == "__main__":
    # CBAM(n_channels_in=4, reduction_ratio=2, kernel_size=3, cbam_status='cbam')
    B, C, H, W = 2, 4, 16, 16
    reduction_ratio = 2
    ks = 3
    mid = int(C / float(reduction_ratio))

    key = jax.random.PRNGKey(0)
    kx, k1, k2, k3, k4, k5, k6 = jax.random.split(key, 7)

    x = jax.random.normal(kx, (B, C, H, W), jnp.float32)
    # Deterministic synthetic parameters (shapes from the module's __init__),
    # pre-transposed in the wrapper layout:
    w1t = jax.random.normal(k1, (C, mid), jnp.float32) * 0.5   # Linear(C->mid).weight.T
    b1 = jax.random.normal(k2, (1, mid), jnp.float32) * 0.1
    w2t = jax.random.normal(k3, (mid, C), jnp.float32) * 0.5   # Linear(mid->C).weight.T
    b2r = jax.random.normal(k4, (1, C), jnp.float32) * 0.1
    cw = jax.random.normal(k5, (2 * ks * ks,), jnp.float32) * 0.2  # Conv2d(2->1,ks).weight
    cb = jax.random.normal(k6, (1,), jnp.float32) * 0.1

    out = cbam_pallas(x, w1t, b1, w2t, b2r, cw, cb, ks)
    out = jax.block_until_ready(out)

    ref = cbam_ref(x, w1t, b1, w2t, b2r, cw, cb, ks)
    err = float(jnp.max(jnp.abs(out - ref)))
    assert jnp.allclose(out, ref, atol=1e-4, rtol=1e-4), f"max abs err = {err}"
    print("KERNEL_OK")
</pallas_src>

<mosaic_0001>
module attributes {stable_mosaic.version = 11 : i64} {
  func.func @_cbam_kernel(%arg0: i32, %arg1: memref<2x4x256xf32, #tpu.memory_space<vmem>>, %arg2: memref<4x2xf32, #tpu.memory_space<vmem>>, %arg3: memref<1x2xf32, #tpu.memory_space<vmem>>, %arg4: memref<2x4xf32, #tpu.memory_space<vmem>>, %arg5: memref<1x4xf32, #tpu.memory_space<vmem>>, %arg6: memref<18xf32, #tpu.memory_space<smem>>, %arg7: memref<1xf32, #tpu.memory_space<smem>>, %arg8: memref<9x256xf32, #tpu.memory_space<vmem>>, %arg9: memref<2x4x256xf32, #tpu.memory_space<vmem>>) attributes {dimension_semantics = [#tpu.dimension_semantics<parallel>], iteration_bounds = array<i64: 1>, scalar_prefetch = 0 : i64, scratch_operands = 0 : i64, tpu.core_type = #tpu.core_type<tc>, window_params = [{transform_indices = @transform_0, window_bounds = array<i64: 2, 4, 256>}, {pipeline_mode = #tpu.pipeline_mode<synchronous>, transform_indices = @transform_1, window_bounds = array<i64: 4, 2>}, {pipeline_mode = #tpu.pipeline_mode<synchronous>, transform_indices = @transform_2, window_bounds = array<i64: 1, 2>}, {pipeline_mode = #tpu.pipeline_mode<synchronous>, transform_indices = @transform_3, window_bounds = array<i64: 2, 4>}, {pipeline_mode = #tpu.pipeline_mode<synchronous>, transform_indices = @transform_4, window_bounds = array<i64: 1, 4>}, {transform_indices = @transform_5, window_bounds = array<i64: 18>}, {transform_indices = @transform_6, window_bounds = array<i64: 1>}, {pipeline_mode = #tpu.pipeline_mode<synchronous>, transform_indices = @transform_7, window_bounds = array<i64: 9, 256>}, {transform_indices = @transform_8, window_bounds = array<i64: 2, 4, 256>}]} {
    %c0 = arith.constant 0 : index
    %c0_0 = arith.constant 0 : index
    %c0_1 = arith.constant 0 : index
    %0 = vector.load %arg1[%c0, %c0_0, %c0_1] : memref<2x4x256xf32, #tpu.memory_space<vmem>>, vector<2x4x256xf32>
    %cst = arith.constant dense<0.000000e+00> : vector<2x4xf32>
    %1 = vector.multi_reduction <add>, %0, %cst [2] : vector<2x4x256xf32> to vector<2x4xf32>
    %cst_2 = arith.constant 3.906250e-03 : f32
    %2 = vector.broadcast %cst_2 : f32 to vector<2x4xf32>
    %3 = arith.mulf %1, %2 : vector<2x4xf32>
    %cst_3 = arith.constant dense<0xFF800000> : vector<2x4xf32>
    %4 = vector.multi_reduction <maximumf>, %0, %cst_3 [2] : vector<2x4x256xf32> to vector<2x4xf32>
    %5 = tpu.concatenate %3, %4 in 0 : vector<2x4xf32>, vector<2x4xf32> -> vector<4x4xf32>
    %c0_4 = arith.constant 0 : index
    %c0_5 = arith.constant 0 : index
    %6 = vector.load %arg3[%c0_4, %c0_5] : memref<1x2xf32, #tpu.memory_space<vmem>>, vector<1x2xf32>
    %7 = vector.shape_cast %6 : vector<1x2xf32> to vector<1x2xf32>
    %8 = vector.broadcast %7 : vector<1x2xf32> to vector<4x2xf32>
    %9 = vector.extract_strided_slice %5 {offsets = [0, 0], sizes = [4, 1], strides = [1, 1]} : vector<4x4xf32> to vector<4x1xf32>
    %c0_6 = arith.constant 0 : index
    %c0_7 = arith.constant 0 : index
    %10 = vector.load %arg2[%c0_6, %c0_7] : memref<4x2xf32, #tpu.memory_space<vmem>>, vector<1x2xf32>
    %11 = vector.broadcast %9 : vector<4x1xf32> to vector<4x2xf32>
    %12 = vector.broadcast %10 : vector<1x2xf32> to vector<4x2xf32>
    %13 = arith.mulf %11, %12 : vector<4x2xf32>
    %14 = arith.addf %8, %13 : vector<4x2xf32>
    %15 = vector.extract_strided_slice %5 {offsets = [0, 1], sizes = [4, 1], strides = [1, 1]} : vector<4x4xf32> to vector<4x1xf32>
    %c1 = arith.constant 1 : index
    %c0_8 = arith.constant 0 : index
    %16 = vector.load %arg2[%c1, %c0_8] : memref<4x2xf32, #tpu.memory_space<vmem>>, vector<1x2xf32>
    %17 = vector.broadcast %15 : vector<4x1xf32> to vector<4x2xf32>
    %18 = vector.broadcast %16 : vector<1x2xf32> to vector<4x2xf32>
    %19 = arith.mulf %17, %18 : vector<4x2xf32>
    %20 = arith.addf %14, %19 : vector<4x2xf32>
    %21 = vector.extract_strided_slice %5 {offsets = [0, 2], sizes = [4, 1], strides = [1, 1]} : vector<4x4xf32> to vector<4x1xf32>
    %c2 = arith.constant 2 : index
    %c0_9 = arith.constant 0 : index
    %22 = vector.load %arg2[%c2, %c0_9] : memref<4x2xf32, #tpu.memory_space<vmem>>, vector<1x2xf32>
    %23 = vector.broadcast %21 : vector<4x1xf32> to vector<4x2xf32>
    %24 = vector.broadcast %22 : vector<1x2xf32> to vector<4x2xf32>
    %25 = arith.mulf %23, %24 : vector<4x2xf32>
    %26 = arith.addf %20, %25 : vector<4x2xf32>
    %27 = vector.extract_strided_slice %5 {offsets = [0, 3], sizes = [4, 1], strides = [1, 1]} : vector<4x4xf32> to vector<4x1xf32>
    %c3 = arith.constant 3 : index
    %c0_10 = arith.constant 0 : index
    %28 = vector.load %arg2[%c3, %c0_10] : memref<4x2xf32, #tpu.memory_space<vmem>>, vector<1x2xf32>
    %29 = vector.broadcast %27 : vector<4x1xf32> to vector<4x2xf32>
    %30 = vector.broadcast %28 : vector<1x2xf32> to vector<4x2xf32>
    %31 = arith.mulf %29, %30 : vector<4x2xf32>
    %32 = arith.addf %26, %31 : vector<4x2xf32>
    %cst_11 = arith.constant 0.000000e+00 : f32
    %33 = vector.broadcast %cst_11 : f32 to vector<4x2xf32>
    %34 = arith.maximumf %32, %33 : vector<4x2xf32>
    %c0_12 = arith.constant 0 : index
    %c0_13 = arith.constant 0 : index
    %35 = vector.load %arg5[%c0_12, %c0_13] : memref<1x4xf32, #tpu.memory_space<vmem>>, vector<1x4xf32>
    %36 = vector.shape_cast %35 : vector<1x4xf32> to vector<1x4xf32>
    %37 = vector.broadcast %36 : vector<1x4xf32> to vector<4x4xf32>
    %38 = vector.extract_strided_slice %34 {offsets = [0, 0], sizes = [4, 1], strides = [1, 1]} : vector<4x2xf32> to vector<4x1xf32>
    %c0_14 = arith.constant 0 : index
    %c0_15 = arith.constant 0 : index
    %39 = vector.load %arg4[%c0_14, %c0_15] : memref<2x4xf32, #tpu.memory_space<vmem>>, vector<1x4xf32>
    %40 = vector.broadcast %38 : vector<4x1xf32> to vector<4x4xf32>
    %41 = vector.broadcast %39 : vector<1x4xf32> to vector<4x4xf32>
    %42 = arith.mulf %40, %41 : vector<4x4xf32>
    %43 = arith.addf %37, %42 : vector<4x4xf32>
    %44 = vector.extract_strided_slice %34 {offsets = [0, 1], sizes = [4, 1], strides = [1, 1]} : vector<4x2xf32> to vector<4x1xf32>
    %c1_16 = arith.constant 1 : index
    %c0_17 = arith.constant 0 : index
    %45 = vector.load %arg4[%c1_16, %c0_17] : memref<2x4xf32, #tpu.memory_space<vmem>>, vector<1x4xf32>
    %46 = vector.broadcast %44 : vector<4x1xf32> to vector<4x4xf32>
    %47 = vector.broadcast %45 : vector<1x4xf32> to vector<4x4xf32>
    %48 = arith.mulf %46, %47 : vector<4x4xf32>
    %49 = arith.addf %43, %48 : vector<4x4xf32>
    %50 = vector.extract_strided_slice %49 {offsets = [0, 0], sizes = [2, 4], strides = [1, 1]} : vector<4x4xf32> to vector<2x4xf32>
    %51 = vector.extract_strided_slice %49 {offsets = [2, 0], sizes = [2, 4], strides = [1, 1]} : vector<4x4xf32> to vector<2x4xf32>
    %52 = arith.addf %50, %51 : vector<2x4xf32>
    %53 = arith.negf %52 : vector<2x4xf32>
    %54 = math.exp %53 : vector<2x4xf32>
    %cst_18 = arith.constant 1.000000e+00 : f32
    %55 = vector.broadcast %cst_18 : f32 to vector<2x4xf32>
    %56 = arith.addf %55, %54 : vector<2x4xf32>
    %57 = arith.divf %55, %56 : vector<2x4xf32>
    %58 = vector.shape_cast %57 : vector<2x4xf32> to vector<2x4x1xf32>
    %59 = vector.broadcast %58 : vector<2x4x1xf32> to vector<2x4x256xf32>
    %60 = arith.mulf %0, %59 : vector<2x4x256xf32>
    %cst_19 = arith.constant dense<0xFF800000> : vector<2x256xf32>
    %61 = vector.multi_reduction <maximumf>, %60, %cst_19 [1] : vector<2x4x256xf32> to vector<2x256xf32>
    %cst_20 = arith.constant dense<0.000000e+00> : vector<2x256xf32>
    %62 = vector.multi_reduction <add>, %60, %cst_20 [1] : vector<2x4x256xf32> to vector<2x256xf32>
    %cst_21 = arith.constant 2.500000e-01 : f32
    %63 = vector.broadcast %cst_21 : f32 to vector<2x256xf32>
    %64 = arith.mulf %62, %63 : vector<2x256xf32>
    %65 = tpu.concatenate %61, %64 in 0 : vector<2x256xf32>, vector<2x256xf32> -> vector<4x256xf32>
    %66 = tpu.iota {dimensions = array<i32: 0>} : vector<4x1xi32>
    %c2_i32 = arith.constant 2 : i32
    %67 = vector.broadcast %c2_i32 : i32 to vector<4x1xi32>
    %68 = arith.cmpi slt, %66, %67 : vector<4x1xi32>
    %cst_22 = arith.constant 0.000000e+00 : f32
    %69 = vector.broadcast %cst_22 : f32 to vector<4x256xf32>
    %c0_23 = arith.constant 0 : index
    %70 = memref.load %arg6[%c0_23] : memref<18xf32, #tpu.memory_space<smem>>
    %c9 = arith.constant 9 : index
    %71 = memref.load %arg6[%c9] : memref<18xf32, #tpu.memory_space<smem>>
    %72 = vector.broadcast %70 : f32 to vector<4x1xf32>
    %73 = vector.broadcast %71 : f32 to vector<4x1xf32>
    %74 = arith.select %68, %72, %73 : vector<4x1xi1>, vector<4x1xf32>
    %c0_24 = arith.constant 0 : index
    %c0_25 = arith.constant 0 : index
    %75 = vector.load %arg8[%c0_24, %c0_25] : memref<9x256xf32, #tpu.memory_space<vmem>>, vector<1x256xf32>
    %c17_i32 = arith.constant 17 : i32
    %76 = tpu.dynamic_rotate %65 by %c17_i32 dim 1 : vector<4x256xf32>, i32 -> vector<4x256xf32>
    %77 = vector.broadcast %75 : vector<1x256xf32> to vector<4x256xf32>
    %78 = arith.mulf %77, %76 : vector<4x256xf32>
    %79 = vector.broadcast %74 : vector<4x1xf32> to vector<4x256xf32>
    %80 = arith.mulf %79, %78 : vector<4x256xf32>
    %81 = arith.addf %69, %80 : vector<4x256xf32>
    %c1_26 = arith.constant 1 : index
    %82 = memref.load %arg6[%c1_26] : memref<18xf32, #tpu.memory_space<smem>>
    %c10 = arith.constant 10 : index
    %83 = memref.load %arg6[%c10] : memref<18xf32, #tpu.memory_space<smem>>
    %84 = vector.broadcast %82 : f32 to vector<4x1xf32>
    %85 = vector.broadcast %83 : f32 to vector<4x1xf32>
    %86 = arith.select %68, %84, %85 : vector<4x1xi1>, vector<4x1xf32>
    %c1_27 = arith.constant 1 : index
    %c0_28 = arith.constant 0 : index
    %87 = vector.load %arg8[%c1_27, %c0_28] : memref<9x256xf32, #tpu.memory_space<vmem>>, vector<1x256xf32>
    %c16_i32 = arith.constant 16 : i32
    %88 = tpu.dynamic_rotate %65 by %c16_i32 dim 1 : vector<4x256xf32>, i32 -> vector<4x256xf32>
    %89 = vector.broadcast %87 : vector<1x256xf32> to vector<4x256xf32>
    %90 = arith.mulf %89, %88 : vector<4x256xf32>
    %91 = vector.broadcast %86 : vector<4x1xf32> to vector<4x256xf32>
    %92 = arith.mulf %91, %90 : vector<4x256xf32>
    %93 = arith.addf %81, %92 : vector<4x256xf32>
    %c2_29 = arith.constant 2 : index
    %94 = memref.load %arg6[%c2_29] : memref<18xf32, #tpu.memory_space<smem>>
    %c11 = arith.constant 11 : index
    %95 = memref.load %arg6[%c11] : memref<18xf32, #tpu.memory_space<smem>>
    %96 = vector.broadcast %94 : f32 to vector<4x1xf32>
    %97 = vector.broadcast %95 : f32 to vector<4x1xf32>
    %98 = arith.select %68, %96, %97 : vector<4x1xi1>, vector<4x1xf32>
    %c2_30 = arith.constant 2 : index
    %c0_31 = arith.constant 0 : index
    %99 = vector.load %arg8[%c2_30, %c0_31] : memref<9x256xf32, #tpu.memory_space<vmem>>, vector<1x256xf32>
    %c15_i32 = arith.constant 15 : i32
    %100 = tpu.dynamic_rotate %65 by %c15_i32 dim 1 : vector<4x256xf32>, i32 -> vector<4x256xf32>
    %101 = vector.broadcast %99 : vector<1x256xf32> to vector<4x256xf32>
    %102 = arith.mulf %101, %100 : vector<4x256xf32>
    %103 = vector.broadcast %98 : vector<4x1xf32> to vector<4x256xf32>
    %104 = arith.mulf %103, %102 : vector<4x256xf32>
    %105 = arith.addf %93, %104 : vector<4x256xf32>
    %c3_32 = arith.constant 3 : index
    %106 = memref.load %arg6[%c3_32] : memref<18xf32, #tpu.memory_space<smem>>
    %c12 = arith.constant 12 : index
    %107 = memref.load %arg6[%c12] : memref<18xf32, #tpu.memory_space<smem>>
    %108 = vector.broadcast %106 : f32 to vector<4x1xf32>
    %109 = vector.broadcast %107 : f32 to vector<4x1xf32>
    %110 = arith.select %68, %108, %109 : vector<4x1xi1>, vector<4x1xf32>
    %c3_33 = arith.constant 3 : index
    %c0_34 = arith.constant 0 : index
    %111 = vector.load %arg8[%c3_33, %c0_34] : memref<9x256xf32, #tpu.memory_space<vmem>>, vector<1x256xf32>
    %c1_i32 = arith.constant 1 : i32
    %112 = tpu.dynamic_rotate %65 by %c1_i32 dim 1 : vector<4x256xf32>, i32 -> vector<4x256xf32>
    %113 = vector.broadcast %111 : vector<1x256xf32> to vector<4x256xf32>
    %114 = arith.mulf %113, %112 : vector<4x256xf32>
    %115 = vector.broadcast %110 : vector<4x1xf32> to vector<4x256xf32>
    %116 = arith.mulf %115, %114 : vector<4x256xf32>
    %117 = arith.addf %105, %116 : vector<4x256xf32>
    %c4 = arith.constant 4 : index
    %118 = memref.load %arg6[%c4] : memref<18xf32, #tpu.memory_space<smem>>
    %c13 = arith.constant 13 : index
    %119 = memref.load %arg6[%c13] : memref<18xf32, #tpu.memory_space<smem>>
    %120 = vector.broadcast %118 : f32 to vector<4x1xf32>
    %121 = vector.broadcast %119 : f32 to vector<4x1xf32>
    %122 = arith.select %68, %120, %121 : vector<4x1xi1>, vector<4x1xf32>
    %c4_35 = arith.constant 4 : index
    %c0_36 = arith.constant 0 : index
    %123 = vector.load %arg8[%c4_35, %c0_36] : memref<9x256xf32, #tpu.memory_space<vmem>>, vector<1x256xf32>
    %124 = vector.broadcast %123 : vector<1x256xf32> to vector<4x256xf32>
    %125 = arith.mulf %124, %65 : vector<4x256xf32>
    %126 = vector.broadcast %122 : vector<4x1xf32> to vector<4x256xf32>
    %127 = arith.mulf %126, %125 : vector<4x256xf32>
    %128 = arith.addf %117, %127 : vector<4x256xf32>
    %c5 = arith.constant 5 : index
    %129 = memref.load %arg6[%c5] : memref<18xf32, #tpu.memory_space<smem>>
    %c14 = arith.constant 14 : index
    %130 = memref.load %arg6[%c14] : memref<18xf32, #tpu.memory_space<smem>>
    %131 = vector.broadcast %129 : f32 to vector<4x1xf32>
    %132 = vector.broadcast %130 : f32 to vector<4x1xf32>
    %133 = arith.select %68, %131, %132 : vector<4x1xi1>, vector<4x1xf32>
    %c5_37 = arith.constant 5 : index
    %c0_38 = arith.constant 0 : index
    %134 = vector.load %arg8[%c5_37, %c0_38] : memref<9x256xf32, #tpu.memory_space<vmem>>, vector<1x256xf32>
    %c255_i32 = arith.constant 255 : i32
    %135 = tpu.dynamic_rotate %65 by %c255_i32 dim 1 : vector<4x256xf32>, i32 -> vector<4x256xf32>
    %136 = vector.broadcast %134 : vector<1x256xf32> to vector<4x256xf32>
    %137 = arith.mulf %136, %135 : vector<4x256xf32>
    %138 = vector.broadcast %133 : vector<4x1xf32> to vector<4x256xf32>
    %139 = arith.mulf %138, %137 : vector<4x256xf32>
    %140 = arith.addf %128, %139 : vector<4x256xf32>
    %c6 = arith.constant 6 : index
    %141 = memref.load %arg6[%c6] : memref<18xf32, #tpu.memory_space<smem>>
    %c15 = arith.constant 15 : index
    %142 = memref.load %arg6[%c15] : memref<18xf32, #tpu.memory_space<smem>>
    %143 = vector.broadcast %141 : f32 to vector<4x1xf32>
    %144 = vector.broadcast %142 : f32 to vector<4x1xf32>
    %145 = arith.select %68, %143, %144 : vector<4x1xi1>, vector<4x1xf32>
    %c6_39 = arith.constant 6 : index
    %c0_40 = arith.constant 0 : index
    %146 = vector.load %arg8[%c6_39, %c0_40] : memref<9x256xf32, #tpu.memory_space<vmem>>, vector<1x256xf32>
    %c241_i32 = arith.constant 241 : i32
    %147 = tpu.dynamic_rotate %65 by %c241_i32 dim 1 : vector<4x256xf32>, i32 -> vector<4x256xf32>
    %148 = vector.broadcast %146 : vector<1x256xf32> to vector<4x256xf32>
    %149 = arith.mulf %148, %147 : vector<4x256xf32>
    %150 = vector.broadcast %145 : vector<4x1xf32> to vector<4x256xf32>
    %151 = arith.mulf %150, %149 : vector<4x256xf32>
    %152 = arith.addf %140, %151 : vector<4x256xf32>
    %c7 = arith.constant 7 : index
    %153 = memref.load %arg6[%c7] : memref<18xf32, #tpu.memory_space<smem>>
    %c16 = arith.constant 16 : index
    %154 = memref.load %arg6[%c16] : memref<18xf32, #tpu.memory_space<smem>>
    %155 = vector.broadcast %153 : f32 to vector<4x1xf32>
    %156 = vector.broadcast %154 : f32 to vector<4x1xf32>
    %157 = arith.select %68, %155, %156 : vector<4x1xi1>, vector<4x1xf32>
    %c7_41 = arith.constant 7 : index
    %c0_42 = arith.constant 0 : index
    %158 = vector.load %arg8[%c7_41, %c0_42] : memref<9x256xf32, #tpu.memory_space<vmem>>, vector<1x256xf32>
    %c240_i32 = arith.constant 240 : i32
    %159 = tpu.dynamic_rotate %65 by %c240_i32 dim 1 : vector<4x256xf32>, i32 -> vector<4x256xf32>
    %160 = vector.broadcast %158 : vector<1x256xf32> to vector<4x256xf32>
    %161 = arith.mulf %160, %159 : vector<4x256xf32>
    %162 = vector.broadcast %157 : vector<4x1xf32> to vector<4x256xf32>
    %163 = arith.mulf %162, %161 : vector<4x256xf32>
    %164 = arith.addf %152, %163 : vector<4x256xf32>
    %c8 = arith.constant 8 : index
    %165 = memref.load %arg6[%c8] : memref<18xf32, #tpu.memory_space<smem>>
    %c17 = arith.constant 17 : index
    %166 = memref.load %arg6[%c17] : memref<18xf32, #tpu.memory_space<smem>>
    %167 = vector.broadcast %165 : f32 to vector<4x1xf32>
    %168 = vector.broadcast %166 : f32 to vector<4x1xf32>
    %169 = arith.select %68, %167, %168 : vector<4x1xi1>, vector<4x1xf32>
    %c8_43 = arith.constant 8 : index
    %c0_44 = arith.constant 0 : index
    %170 = vector.load %arg8[%c8_43, %c0_44] : memref<9x256xf32, #tpu.memory_space<vmem>>, vector<1x256xf32>
    %c239_i32 = arith.constant 239 : i32
    %171 = tpu.dynamic_rotate %65 by %c239_i32 dim 1 : vector<4x256xf32>, i32 -> vector<4x256xf32>
    %172 = vector.broadcast %170 : vector<1x256xf32> to vector<4x256xf32>
    %173 = arith.mulf %172, %171 : vector<4x256xf32>
    %174 = vector.broadcast %169 : vector<4x1xf32> to vector<4x256xf32>
    %175 = arith.mulf %174, %173 : vector<4x256xf32>
    %176 = arith.addf %164, %175 : vector<4x256xf32>
    %177 = vector.extract_strided_slice %176 {offsets = [0, 0], sizes = [2, 256], strides = [1, 1]} : vector<4x256xf32> to vector<2x256xf32>
    %178 = vector.extract_strided_slice %176 {offsets = [2, 0], sizes = [2, 256], strides = [1, 1]} : vector<4x256xf32> to vector<2x256xf32>
    %179 = arith.addf %177, %178 : vector<2x256xf32>
    %c0_45 = arith.constant 0 : index
    %180 = memref.load %arg7[%c0_45] : memref<1xf32, #tpu.memory_space<smem>>
    %181 = vector.broadcast %180 : f32 to vector<2x256xf32>
    %182 = arith.addf %179, %181 : vector<2x256xf32>
    %183 = arith.negf %182 : vector<2x256xf32>
    %184 = math.exp %183 : vector<2x256xf32>
    %cst_46 = arith.constant 1.000000e+00 : f32
    %185 = vector.broadcast %cst_46 : f32 to vector<2x256xf32>
    %186 = arith.addf %185, %184 : vector<2x256xf32>
    %187 = arith.divf %185, %186 : vector<2x256xf32>
    %188 = vector.shape_cast %187 : vector<2x256xf32> to vector<2x1x256xf32>
    %189 = vector.broadcast %188 : vector<2x1x256xf32> to vector<2x4x256xf32>
    %190 = arith.mulf %60, %189 : vector<2x4x256xf32>
    %c0_47 = arith.constant 0 : index
    %c0_48 = arith.constant 0 : index
    %c0_49 = arith.constant 0 : index
    %191 = vector.load %arg9[%c0_47, %c0_48, %c0_49] : memref<2x4x256xf32, #tpu.memory_space<vmem>>, vector<2x4x256xf32>
    tpu.vector_store %arg9[%c0_47, %c0_48, %c0_49], %190 {strides = array<i32>} : memref<2x4x256xf32, #tpu.memory_space<vmem>>, vector<2x4x256xf32>,
    return
  }
  func.func @transform_0(%arg0: i32) -> (i32, i32, i32) {
    %c0_i32 = arith.constant 0 : i32
    %c0_i32_0 = arith.constant 0 : i32
    %c0_i32_1 = arith.constant 0 : i32
    return %arg0, %c0_i32, %c0_i32_0 : i32, i32, i32
  }
  func.func @transform_1(%arg0: i32) -> (i32, i32) {
    %c0_i32 = arith.constant 0 : i32
    %c0_i32_0 = arith.constant 0 : i32
    %c0_i32_1 = arith.constant 0 : i32
    return %c0_i32, %c0_i32_0 : i32, i32
  }
  func.func @transform_2(%arg0: i32) -> (i32, i32) {
    %c0_i32 = arith.constant 0 : i32
    %c0_i32_0 = arith.constant 0 : i32
    %c0_i32_1 = arith.constant 0 : i32
    return %c0_i32, %c0_i32_0 : i32, i32
  }
  func.func @transform_3(%arg0: i32) -> (i32, i32) {
    %c0_i32 = arith.constant 0 : i32
    %c0_i32_0 = arith.constant 0 : i32
    %c0_i32_1 = arith.constant 0 : i32
    return %c0_i32, %c0_i32_0 : i32, i32
  }
  func.func @transform_4(%arg0: i32) -> (i32, i32) {
    %c0_i32 = arith.constant 0 : i32
    %c0_i32_0 = arith.constant 0 : i32
    %c0_i32_1 = arith.constant 0 : i32
    return %c0_i32, %c0_i32_0 : i32, i32
  }
  func.func @transform_5(%arg0: i32) -> i32 {
    %c0_i32 = arith.constant 0 : i32
    %c0_i32_0 = arith.constant 0 : i32
    return %c0_i32 : i32
  }
  func.func @transform_6(%arg0: i32) -> i32 {
    %c0_i32 = arith.constant 0 : i32
    %c0_i32_0 = arith.constant 0 : i32
    return %c0_i32 : i32
  }
  func.func @transform_7(%arg0: i32) -> (i32, i32) {
    %c0_i32 = arith.constant 0 : i32
    %c0_i32_0 = arith.constant 0 : i32
    %c0_i32_1 = arith.constant 0 : i32
    return %c0_i32, %c0_i32_0 : i32, i32
  }
  func.func @transform_8(%arg0: i32) -> (i32, i32, i32) {
    %c0_i32 = arith.constant 0 : i32
    %c0_i32_0 = arith.constant 0 : i32
    %c0_i32_1 = arith.constant 0 : i32
    return %arg0, %c0_i32, %c0_i32_0 : i32, i32, i32
  }
}

</mosaic_0001>

<bundles_post_ra>
// kernel: tpu_custom_call.1
= control target key start
LH: loop header
LB: loop body
LE: loop exit
PB: predicated region body
PF: predicated region fallthrough
CT: control target
= control target key end

     0   :  { %14 = vsyncpa [#allocation4], 0  ;;  %s1347_s0 = inlined_call_operand.hbm [shape: f32[2,4,256], index: 0, kind: input, shape index: {}]   ;;  %s1348_s1 = inlined_call_operand.vmem [shape: f32[4,2], index: 1, kind: input, shape index: {}]   ;;  %s1349_s2 = inlined_call_operand.hbm [shape: f32[1,2], index: 2, kind: input, shape index: {}]   ;;  %s1350_s3 = inlined_call_operand.hbm [shape: f32[2,4], index: 3, kind: input, shape index: {}]   ;;  %s1351_s4 = inlined_call_operand.hbm [shape: f32[1,4], index: 4, kind: input, shape index: {}]   ;;  %s1352_s5 = inlined_call_operand.hbm [shape: f32[18], index: 5, kind: input, shape index: {}]   ;;  %s1353_s6 = inlined_call_operand.<no memory space> [shape: f32[1], index: 6, kind: input, shape index: {}]   ;;  %s1354_s7 = inlined_call_operand.vmem [shape: f32[9,256], index: 7, kind: input, shape index: {}]   ;;  %s1355_s8 = inlined_call_operand.hbm [shape: f32[2,4,256], index: 8, kind: output, shape index: {}]  }
   0x1   :  { %15 = vsyncpa [#allocation8], 0 }
   0x2   :  { %16 = vsyncpa [#allocation11], 0 }
   0x3   :  { %17 = vsyncpa [#allocation6], 0 }
   0x4   :  { %18 = vsyncpa [#allocation5], 0  ;;  %s939_s27 = smov [#allocation7]   ;;  %s940_s29 = smov [#allocation3]  }
   0x5   :  { %s39_s28 = sshll.u32 %s939_s27, 4  ;;  %s24_s30 = sshll.u32 %s940_s29, 4  ;;  %s40_s28 = int_to_ptr.vmem [resolvable:$true] %s39_s28  ;;  %s1006_s30 = int_to_ptr.vmem [resolvable:$true] %s24_s30 }
   0x6   :  { %s809_s11 = scalar_lea.hbm %s1349_s2, 16 }
   0x7   :  { %p810_p0 = scmp.ne.s32.totalorder %s1349_s2, %s809_s11  ;;  %p813_p1 = scmp.lt.u32.totalorder %s809_s11, %s1349_s2 }
   0x9   :  { %p815_p2 = pnand %p813_p1, %p810_p0 }
   0xb   :  { %818 = shalt.err (!%p815_p2)
}
   0xc   :  { %s819_s16 = scalar_lea.vmem %s40_s28, 16  ;;  %s823_s17 = scalar_lea.vmem %s40_s28, 32 }
   0xd   :  { %p820_p3 = scmp.ne.s32.totalorder %s40_s28, %s819_s16  ;;  %p824_p4 = scmp.lt.s32.totalorder %s40_s28, %s40_s28 }
   0xe   :  { %p825_p5 = scmp.lt.s32.totalorder %s823_s17, %s819_s16 }
  0x10   :  { %p826_p6 = por %p825_p5, %p824_p4 }
  0x12   :  { %p827_p7 = pnand %p826_p6, %p820_p3 }
  0x14   :  { %830 = shalt.err (!%p827_p7)
}
  0x15   :  { %42 = dma.hbm_to_vmem [thread:$0]  %s1349_s2, 16, %s40_s28, [#allocation8]  }
  0x16   :  { %s831_s22 = scalar_lea.hbm %s1347_s0, 256 }
  0x17   :  { %p832_p8 = scmp.ne.s32.totalorder %s1347_s0, %s831_s22  ;;  %p835_p9 = scmp.lt.u32.totalorder %s831_s22, %s1347_s0 }
  0x19   :  { %p837_p10 = pnand %p835_p9, %p832_p8 }
  0x1b   :  { %840 = shalt.err (!%p837_p10)
}
  0x1c   :  { %s841_s27 = scalar_lea.vmem %s1006_s30, 256  ;;  %p846_p12 = scmp.lt.s32.totalorder %s1006_s30, %s1006_s30 }
  0x1d   :  { %p842_p11 = scmp.ne.s32.totalorder %s1006_s30, %s841_s27  ;;  %p847_p13 = scmp.lt.s32.totalorder %s841_s27, %s841_s27 }
  0x1f   :  { %p848_p0 = por %p847_p13, %p846_p12 }
  0x21   :  { %p849_p1 = pnand %p848_p0, %p842_p11 }
  0x23   :  { %852 = shalt.err (!%p849_p1)
}
  0x24   :  { %s941_s2 = smov 128   ;;  %s942_s28 = smov 8  }
  0x25   :  { %30 = dma.hbm_to_vmem [thread:$0]  %s1347_s0, 256, %s1006_s30, [#allocation4], %s941_s2, %s941_s2, %s942_s28  }
  0x26   :  { %s943_s10 = smov [#allocation9]   ;;  %s944_s12 = smov [#allocation10]  }
  0x27   :  { %s49_s11 = sshll.u32 %s943_s10, 4  ;;  %s59_s13 = sshll.u32 %s944_s12, 4  ;;  %s50_s11 = int_to_ptr.vmem [resolvable:$true] %s49_s11  ;;  %s60_s13 = int_to_ptr.vmem [resolvable:$true] %s59_s13 }
  0x28   :  { %s853_s16 = scalar_lea.hbm %s1350_s3, 32 }
  0x29   :  { %p854_p2 = scmp.ne.s32.totalorder %s1350_s3, %s853_s16  ;;  %p857_p3 = scmp.lt.u32.totalorder %s853_s16, %s1350_s3 }
  0x2b   :  { %p859_p4 = pnand %p857_p3, %p854_p2 }
  0x2d   :  { %862 = shalt.err (!%p859_p4)
}
  0x2e   :  { %s863_s0 = scalar_lea.vmem %s50_s11, 32  ;;  %p868_p6 = scmp.lt.s32.totalorder %s50_s11, %s50_s11 }
  0x2f   :  { %p864_p5 = scmp.ne.s32.totalorder %s50_s11, %s863_s0  ;;  %p869_p7 = scmp.lt.s32.totalorder %s863_s0, %s863_s0 }
  0x31   :  { %p870_p8 = por %p869_p7, %p868_p6 }
  0x33   :  { %p871_p9 = pnand %p870_p8, %p864_p5 }
  0x35   :  { %874 = shalt.err (!%p871_p9)
}
  0x36   :  { %52 = dma.hbm_to_vmem [thread:$0]  %s1350_s3, 32, %s50_s11, [#allocation8]  }
  0x37   :  { %s875_s24 = scalar_lea.hbm %s1351_s4, 16 }
  0x38   :  { %p876_p10 = scmp.ne.s32.totalorder %s1351_s4, %s875_s24  ;;  %p879_p11 = scmp.lt.u32.totalorder %s875_s24, %s1351_s4 }
  0x3a   :  { %p881_p12 = pnand %p879_p11, %p876_p10 }
  0x3c   :  { %884 = shalt.err (!%p881_p12)
}
  0x3d   :  { %s885_s9 = scalar_lea.vmem %s60_s13, 16  ;;  %s889_s10 = scalar_lea.vmem %s60_s13, 32 }
  0x3e   :  { %p886_p13 = scmp.ne.s32.totalorder %s60_s13, %s885_s9  ;;  %p890_p0 = scmp.lt.s32.totalorder %s60_s13, %s60_s13 }
  0x3f   :  { %p891_p1 = scmp.lt.s32.totalorder %s889_s10, %s885_s9 }
  0x41   :  { %p892_p2 = por %p891_p1, %p890_p0 }
  0x43   :  { %p893_p3 = pnand %p892_p2, %p886_p13 }
  0x45   :  { %896 = shalt.err (!%p893_p3)
}
  0x46   :  { %62 = dma.hbm_to_vmem [thread:$0]  %s1351_s4, 16, %s60_s13, [#allocation11]  }
  0x47   :  { %s897_s15 = scalar_lea.hbm %s1352_s5, 16 }
  0x48   :  { %p898_p4 = scmp.ne.s32.totalorder %s1352_s5, %s897_s15  ;;  %p901_p5 = scmp.lt.u32.totalorder %s897_s15, %s1352_s5 }
  0x4a   :  { %p903_p6 = pnand %p901_p5, %p898_p4 }
  0x4c   :  { %906 = shalt.err (!%p903_p6)
}
  0x4d   :  { %s945_s20 = smov [#allocation12]  }
  0x4e   :  { %70 = dma.hbm_to_smem %s1352_s5, 16, %s945_s20, [#allocation6]  }
  0x4f   :  { %929 = dma.done.wait [#allocation4], 256  }
  0x50   :  { %930 = vsyncadd [#allocation4], 4294967040 }
  0x51   :  { %931 = dma.done.wait [#allocation8], 48  }
  0x52   :  { %932 = vsyncadd [#allocation8], 4294967248 }
  0x53   :  { %933 = dma.done.wait [#allocation11], 16  }
  0x54   :  { %934 = vsyncadd [#allocation11], 4294967280 }
  0x55   :  { %935 = dma.done.wait [#allocation6], 16  }
  0x56   :  { %936 = vsyncadd [#allocation6], 4294967280 }
  0x57   :  { %90 = sfence }
  0x58   :  { %v1076_v0 = vld [vmem:[#allocation3] sm:$0xff]  ;;  %vm99_vm0 = vcmask 1043456   ;;  %v1078_v1 = vld [vmem:[#allocation3 + $0x8] sm:$0xff]  ;;  %v946_v16 = vmov 1   ;;  %v947_v17 = vmov 0   ;;  %v124_v18 = vlaneseq  ;;  %s952_s26 = smov 16  }
  0x59   :  { %v95_v2 = vcombine.high %v1076_v0, %v1076_v0  ;;  %v112_v3 = vsel %vm99_vm0, %v1076_v0, -inf  ;;  %v100_v4 = vsel %vm99_vm0, %v1076_v0, 0.0  ;;  %v96_v5 = vcombine.high %v1078_v1, %v1078_v1  ;;  %789 = vset.pattern.permute.xlu1 %v946_v16  ;;  %788 = vset.pattern.permute.xlu0 %v947_v17  ;;  %v731_v37 = vld [vmem:[%s1348_s1] ss:$0 sm:$0xff]  ;;  %v730_v39 = vld [vmem:[#allocation7] ss:$0 sm:$0xff] }
  0x5a   :  { %v117_v6 = vsel %vm99_vm0, %v1078_v1, -inf  ;;  %v105_v7 = vsel %vm99_vm0, %v1078_v1, 0.0  ;;  %v1096_v19 = vand.u32 127, %v124_v18  ;;  %v1098_v20 = vshrl.u32 %v124_v18, 7  ;;  %v732_v42 = vld [vmem:[%s1348_s1 + $0x1] ss:$0 sm:$0xff] }
  0x5b   :  { %v113_v8 = vsel %vm99_vm0, %v95_v2, -inf  ;;  %v101_v9 = vsel %vm99_vm0, %v95_v2, 0.0  ;;  %v118_v10 = vsel %vm99_vm0, %v96_v5, -inf  ;;  %v106_v11 = vsel %vm99_vm0, %v96_v5, 0.0  ;;  %v733_v44 = vld [vmem:[%s1348_s1 + $0x2] ss:$0 sm:$0xff] }
  0x5c   :  { %v114_v12 = vmax.f32 %v112_v3, %v113_v8  ;;  %v102_v13 = vadd.f32 %v101_v9, %v100_v4  ;;  %v119_v14 = vmax.f32 %v117_v6, %v118_v10  ;;  %v107_v15 = vadd.f32 %v106_v11, %v105_v7  ;;  %v734_v49 = vld [vmem:[%s1348_s1 + $0x3] ss:$0 sm:$0xff]  ;;  %v736_v55 = vld [vmem:[#allocation9] ss:$0 sm:$0xff]  ;;  %v735_v58 = vld [vmem:[#allocation10] ss:$0 sm:$0xff] }
  0x5d   :  { %v128_v23 = vsub.s32 %v1096_v19, %v1098_v20  ;;  %vm147_vm1 = vcmask 1043459   ;;  %vm134_vm2 = vcmask 1041409   ;;  %vm150_vm3 = vcmask 1041408   ;;  %v737_v59 = vld [vmem:[#allocation9 + $0x1] ss:$0 sm:$0xff]  ;;  %s951_s1 = smov 17  }
  0x5e   :  { %115 = vmax.xlane.f32.xlu1 %v114_v12  ;;  %103 = vadd.xlane.f32.xlu0 %v102_v13  ;;  %v948_v35 = vmov 2   ;;  %v949_v36 = vmov 3   ;;  %v1118_v7 = vsub.s32 0, %v1098_v20  ;;  %v1121_v9 = vsub.s32 1, %v1098_v20  ;;  %s953_s27 = smov 15   ;;  %s954_s29 = smov 1  }
  0x5f   :  { %v950_v12 = vmov 839922192   ;;  %s955_s9 = smov 127   ;;  %s956_s10 = smov 113   ;;  %vm365_vm4 = vcmp.lt.s32.totalorder %v1098_v20, 2  ;;  %vm407_vm5 = vcmp.lt.s32.totalorder %v1096_v19, 16 }
  0x60   :  { %v262_v13 = vunpack.c.l.s4 %v950_v12  ;;  %s957_s3 = smov 112   ;;  %s958_s11 = smov 111   ;;  %vm376_vm6 = vcmp.lt.s32.totalorder %v1096_v19, 17  ;;  %vm438_vm7 = vcmp.lt.s32.totalorder %v1096_v19, 15  ;;  %vm469_vm8 = vcmp.lt.s32.totalorder %v1096_v19, 1 }
  0x61   :  { %s749_s12 = sld [smem:[#allocation12 + $0x4]]  ;;  %s750_s14 = sld [smem:[#allocation12 + $0xd]]  ;;  %vm524_vm9 = vcmp.lt.s32.totalorder %v1096_v19, 127  ;;  %vm555_vm10 = vcmp.lt.s32.totalorder %v1096_v19, 113  ;;  %vm586_vm11 = vcmp.lt.s32.totalorder %v1096_v19, 112  ;;  %vm617_vm12 = vcmp.lt.s32.totalorder %v1096_v19, 111 }
  0x62   :  { %120 = vmax.xlane.f32.xlu1 %v119_v14  ;;  %108 = vadd.xlane.f32.xlu0 %v107_v15  ;;  %v263_v14 = vunpack.c.0.s8 %v262_v13  ;;  %s366_s15 = sld [smem:[#allocation12]]  ;;  %s739_s16 = sld [smem:[#allocation12 + $0x9]] }
  0x63   :  { %s1174_s17 = sld [smem:[#allocation12 + $0x1]]  ;;  %s741_s18 = sld [smem:[#allocation12 + $0xa]] }
  0x64   :  { %v266_v15 = vsub.s32 %v263_v14, %v1098_v20  ;;  %s1184_s4 = sld [smem:[#allocation12 + $0x2]]  ;;  %s1186_s5 = sld [smem:[#allocation12 + $0xb]] }
  0x65   :  { %s1189_s13 = sld [smem:[#allocation12 + $0x3]]  ;;  %s1191_s21 = sld [smem:[#allocation12 + $0xc]] }
  0xeb   :  { %v116_v21 = vpop.xlane.xlu1 %115  ;;  %v104_v22 = vpop.xlane.xlu0 %103 }
  0xec   :  { %v110_v24 = vmul.f32 0.00390625, %v104_v22  ;;  %v142_v29 = vrot.slane %v116_v21, %v128_v23 }
  0xee   :  { %v129_v30 = vrot.slane %v110_v24, %v128_v23 }
  0xef   :  { %v121_v25 = vpop.xlane.xlu1 %120  ;;  %v109_v26 = vpop.xlane.xlu0 %108 }
  0xf0   :  { %v146_v27 = vrot.slane %v121_v25, %v128_v23  ;;  %v111_v28 = vmul.f32 0.00390625, %v109_v26 }
  0xf2   :  { %v133_v31 = vrot.slane %v111_v28, %v128_v23  ;;  %v148_v32 = vsel %vm147_vm1, %v146_v27, %v142_v29 }
  0xf4   :  { %v135_v33 = vsel %vm134_vm2, %v133_v31, %v129_v30 }
  0xf5   :  { %v151_v34 = vsel %vm150_vm3, %v135_v33, %v148_v32 }
  0xf6   :  { %173 = vperm.xlu1 %789, %v151_v34   ;;  %162 = vperm.xlu0 %788, %v151_v34  }
  0xfa   :  { %790 = vset.pattern.permute.xlu1 %v948_v35  ;;  %794 = vset.pattern.permute.xlu0 %v946_v16 }
  0xfb   :  { %184 = vperm.xlu1 %790, %v151_v34  }
  0xff   :  { %791 = vset.pattern.permute.xlu1 %v949_v36 }
 0x100   :  { %195 = vperm.xlu1 %791, %v151_v34  }
 0x104   :  { %792 = vset.pattern.permute.xlu1 %v947_v17 }
 0x175   :  { %v174_v38 = vpop.permute.xlu1 %173  ;;  %v163_v40 = vpop.permute.xlu0 %162 }
 0x176   :  { %v169_v41 = vmul.f32 %v731_v37, %v163_v40  ;;  %v180_v45 = vmul.f32 %v732_v42, %v174_v38 }
 0x178   :  { %v170_v43 = vadd.f32 %v730_v39, %v169_v41 }
 0x17a   :  { %v185_v46 = vpop.permute.xlu1 %184  ;;  %v181_v47 = vadd.f32 %v180_v45, %v170_v43 }
 0x17b   :  { %v191_v48 = vmul.f32 %v733_v44, %v185_v46 }
 0x17d   :  { %v192_v51 = vadd.f32 %v191_v48, %v181_v47 }
 0x17f   :  { %v196_v50 = vpop.permute.xlu1 %195 }
 0x180   :  { %v202_v52 = vmul.f32 %v734_v49, %v196_v50 }
 0x182   :  { %v203_v53 = vadd.f32 %v202_v52, %v192_v51 }
 0x184   :  { %v204_v54 = vmax.f32 %v203_v53, 0.0 }
 0x186   :  { %215 = vperm.xlu1 %792, %v204_v54  }
 0x18a   :  { %793 = vset.pattern.permute.xlu1 %v946_v16 }
 0x18b   :  { %226 = vperm.xlu1 %793, %v204_v54  }
 0x205   :  { %v216_v56 = vpop.permute.xlu1 %215 }
 0x206   :  { %v222_v57 = vmul.f32 %v736_v55, %v216_v56 }
 0x208   :  { %v223_v61 = vadd.f32 %v735_v58, %v222_v57 }
 0x20a   :  { %v227_v60 = vpop.permute.xlu1 %226 }
 0x20b   :  { %v233_v62 = vmul.f32 %v737_v59, %v227_v60 }
 0x20d   :  { %v234_v63 = vadd.f32 %v233_v62, %v223_v61 }
 0x20f   :  { %v236_v2 = vrot.slane %v234_v63, 2 }
 0x211   :  { %v238_v3 = vadd.f32 %v236_v2, %v234_v63 }
 0x213   :  { %v738_v4 = vmul.f32 -1.442695, %v238_v3 }
 0x215   :  { %797 = vpow2.f32 %v738_v4 }
 0x21f   :  { %v798_v5 = vpop.eup %797 }
 0x220   :  { %v242_v6 = vadd.f32 1.0, %v798_v5 }
 0x222   :  { %799 = vrcp.f32 %v242_v6 }
 0x22c   :  { %v800_v8 = vpop.eup %799 }
 0x22d   :  { %v248_v10 = vrot.slane %v800_v8, %v1118_v7  ;;  %v255_v11 = vrot.slane %v800_v8, %v1121_v9 }
 0x22f   :  { %250 = vbcast.lane.b32.xlu1 %v248_v10, 256 }
 0x233   :  { %257 = vbcast.lane.b32.xlu1 %v255_v11, 256 }
 0x2a1   :  { %v251_v16 = vpop.permute.xlu1 %250 }
 0x2a2   :  { %v267_v17 = vrot.slane %v251_v16, %v266_v15 }
 0x2a4   :  { %v1127_v18 = vmul.f32 %v267_v17, %v1076_v0 }
 0x2a5   :  { %v258_v21 = vpop.permute.xlu1 %257 }
 0x2a6   :  { %v281_v22 = vcombine.high %v1127_v18, %v1127_v18  ;;  %v285_v23 = vsel %vm99_vm0, %v1127_v18, -inf  ;;  %v313_v24 = vsel %vm99_vm0, %v1127_v18, 0.0  ;;  %v274_v25 = vrot.slane %v258_v21, %v266_v15 }
 0x2a7   :  { %v286_v26 = vrot.slane %v285_v23, 4  ;;  %v314_v27 = vrot.slane %v313_v24, 4 }
 0x2a8   :  { %v292_v28 = vsel %vm99_vm0, %v281_v22, -inf  ;;  %v320_v29 = vsel %vm99_vm0, %v281_v22, 0.0  ;;  %v1138_v0 = vmul.f32 %v274_v25, %v1078_v1 }
 0x2a9   :  { %v287_v30 = vmax.f32 %v285_v23, %v286_v26  ;;  %v293_v31 = vrot.slane %v292_v28, 4  ;;  %v315_v32 = vadd.f32 %v314_v27, %v313_v24  ;;  %v321_v33 = vrot.slane %v320_v29, 4 }
 0x2aa   :  { %v282_v34 = vcombine.high %v1138_v0, %v1138_v0  ;;  %v299_v35 = vsel %vm99_vm0, %v1138_v0, -inf  ;;  %v327_v36 = vsel %vm99_vm0, %v1138_v0, 0.0 }
 0x2ab   :  { %v288_v37 = vrot.slane %v287_v30, 2  ;;  %v294_v38 = vmax.f32 %v292_v28, %v293_v31  ;;  %v316_v39 = vrot.slane %v315_v32, 2  ;;  %v322_v40 = vadd.f32 %v321_v33, %v320_v29 }
 0x2ac   :  { %v300_v41 = vrot.slane %v299_v35, 4  ;;  %v306_v1 = vsel %vm99_vm0, %v282_v34, -inf  ;;  %v328_v42 = vrot.slane %v327_v36, 4  ;;  %v334_v43 = vsel %vm99_vm0, %v282_v34, 0.0 }
 0x2ad   :  { %v295_v44 = vrot.slane %v294_v38, 2  ;;  %v317_v45 = vadd.f32 %v316_v39, %v315_v32  ;;  %v323_v46 = vrot.slane %v322_v40, 2  ;;  %v307_v48 = vrot.slane %v306_v1, 4  ;;  %v371_v34 = vld [vmem:[%s1354_s7] ss:$8 sm:$0x3] }
 0x2ae   :  { %v301_v47 = vmax.f32 %v299_v35, %v300_v41  ;;  %v329_v49 = vadd.f32 %v328_v42, %v327_v36  ;;  %v335_v50 = vrot.slane %v334_v43, 4  ;;  %v289_v51 = vmax.f32 %v287_v30, %v288_v37  ;;  %v1182_v35 = vld [vmem:[%s1354_s7 + $0x4] ss:$8 sm:$0x3] }
 0x2af   :  { %v318_v52 = vrot.slane %v317_v45, 1  ;;  %v324_v53 = vadd.f32 %v323_v46, %v322_v40  ;;  %v308_v55 = vmax.f32 %v306_v1, %v307_v48  ;;  %v296_v58 = vmax.f32 %v294_v38, %v295_v44  ;;  %v742_v41 = vld [vmem:[%s1354_s7 + $0x1] ss:$8 sm:$0x3] }
 0x2b0   :  { %v302_v54 = vrot.slane %v301_v47, 2  ;;  %v330_v56 = vrot.slane %v329_v49, 2  ;;  %v336_v57 = vadd.f32 %v335_v50, %v334_v43  ;;  %v290_v2 = vrot.slane %v289_v51, 1  ;;  %v745_v46 = vld [vmem:[%s1354_s7 + $0x2] ss:$8 sm:$0x3] }
 0x2b1   :  { %v325_v59 = vrot.slane %v324_v53, 1  ;;  %v309_v61 = vrot.slane %v308_v55, 2  ;;  %v319_v3 = vadd.f32 %v318_v52, %v317_v45  ;;  %v297_v10 = vrot.slane %v296_v58, 1 }
 0x2b2   :  { %v303_v60 = vmax.f32 %v301_v47, %v302_v54  ;;  %v331_v62 = vadd.f32 %v330_v56, %v329_v49  ;;  %v337_v63 = vrot.slane %v336_v57, 2  ;;  %v291_v16 = vmax.f32 %v289_v51, %v290_v2 }
 0x2b3   :  { %v310_v5 = vmax.f32 %v308_v55, %v309_v61  ;;  %v326_v11 = vadd.f32 %v325_v59, %v324_v53  ;;  %v341_v17 = vmul.f32 0.25, %v319_v3  ;;  %v298_v24 = vmax.f32 %v296_v58, %v297_v10 }
 0x2b4   :  { %v304_v4 = vrot.slane %v303_v60, 1  ;;  %v332_v6 = vrot.slane %v331_v62, 1  ;;  %v338_v8 = vadd.f32 %v337_v63, %v336_v57  ;;  %v491_v37 = vstv %s749_s12  ;;  %s1255_s12 = sld [smem:[#allocation12 + $0x7]] }
 0x2b5   :  { %v311_v13 = vrot.slane %v310_v5, 1  ;;  %v342_v25 = vmul.f32 0.25, %v326_v11  ;;  %v492_v38 = vstv %s750_s14  ;;  %v368_v39 = vstv %s366_s15  ;;  %s1257_s14 = sld [smem:[#allocation12 + $0x10]] }
 0x2b6   :  { %v305_v12 = vmax.f32 %v303_v60, %v304_v4  ;;  %v333_v14 = vadd.f32 %v332_v6, %v331_v62  ;;  %v339_v15 = vrot.slane %v338_v8, 1  ;;  %v369_v40 = vstv %s739_s16  ;;  %v748_v62 = vld [vmem:[%s1354_s7 + $0x3] ss:$8 sm:$0x3] }
 0x2b7   :  { %v312_v21 = vmax.f32 %v310_v5, %v311_v13  ;;  %v398_v42 = vstv %s1174_s17  ;;  %v399_v43 = vstv %s741_s18  ;;  %v500_v44 = vrot.slane %v1182_v35, %v1118_v7  ;;  %s1278_s17 = sld [smem:[#allocation12 + $0x8]]  ;;  %s1280_s18 = sld [smem:[#allocation12 + $0x11]] }
 0x2b8   :  { %v340_v22 = vadd.f32 %v339_v15, %v338_v8  ;;  %v343_v23 = vmul.f32 0.25, %v333_v14  ;;  %v349_v27 = vsel %vm134_vm2, %v305_v12, %v291_v16  ;;  %v383_v45 = vrot.slane %v371_v34, %v1118_v7  ;;  %v754_v15 = vld [vmem:[%s1354_s7 + $0x5] ss:$8 sm:$0x3] }
 0x2b9   :  { %v350_v30 = vsel %vm134_vm2, %v312_v21, %v298_v24  ;;  %v1207_v47 = vsel %vm365_vm4, %v491_v37, %v492_v38  ;;  %v504_v48 = vrot.slane %v1182_v35, %v1121_v9  ;;  %v370_v49 = vsel %vm365_vm4, %v368_v39, %v369_v40 }
 0x2ba   :  { %v344_v26 = vmul.f32 0.25, %v340_v22  ;;  %v357_v28 = vsel %vm147_vm1, %v343_v23, %v341_v17  ;;  %v387_v50 = vrot.slane %v371_v34, %v1121_v9  ;;  %v414_v51 = vrot.slane %v742_v41, %v1118_v7 }
 0x2bb   :  { %v1151_v29 = vsel %vm150_vm3, %v349_v27, %v357_v28  ;;  %v418_v52 = vrot.slane %v742_v41, %v1121_v9  ;;  %v400_v54 = vsel %vm365_vm4, %v398_v42, %v399_v43  ;;  %v445_v60 = vrot.slane %v745_v46, %v1118_v7  ;;  %v757_v41 = vld [vmem:[%s1354_s7 + $0x6] ss:$8 sm:$0x3] }
 0x2bc   :  { %372 = vrot.lane.b32.xlu1 %v1151_v29, %s951_s1  ;;  %v358_v31 = vsel %vm147_vm1, %v344_v26, %v342_v25  ;;  %v449_v61 = vrot.slane %v745_v46, %v1121_v9  ;;  %v429_v63 = vstv %s1184_s4  ;;  %v430_v2 = vstv %s1186_s5 }
 0x2bd   :  { %v1157_v32 = vsel %vm150_vm3, %v350_v30, %v358_v31  ;;  %v507_v3 = vmul.f32 %v500_v44, %v1151_v29  ;;  %v460_v8 = vstv %s1189_s13  ;;  %v461_v10 = vstv %s1191_s21 }
 0x2be   :  { %374 = vrot.lane.b32.xlu0 %v1157_v32, %s951_s1  ;;  %v476_v22 = vrot.slane %v748_v62, %v1118_v7  ;;  %v480_v23 = vrot.slane %v748_v62, %v1121_v9  ;;  %v431_v24 = vsel %vm365_vm4, %v429_v63, %v430_v2  ;;  %v462_v25 = vsel %vm365_vm4, %v460_v8, %v461_v10  ;;  %v760_v63 = vld [vmem:[%s1354_s7 + $0x7] ss:$8 sm:$0x3]  ;;  %v763_v8 = vld [vmem:[%s1354_s7 + $0x10] ss:$8 sm:$0x3] }
 0x2bf   :  { %v1252_v26 = vmul.f32 %v507_v3, %v1207_v47  ;;  %v508_v27 = vmul.f32 %v504_v48, %v1157_v32  ;;  %v531_v31 = vrot.slane %v754_v15, %v1118_v7  ;;  %v535_v43 = vrot.slane %v754_v15, %v1121_v9 }
 0x2c0   :  { %403 = vrot.lane.b32.xlu1 %v1151_v29, %s952_s26  ;;  %v578_v62 = vstv %s1257_s14  ;;  %v593_v15 = vrot.slane %v760_v63, %v1118_v7 }
 0x2c2   :  { %405 = vrot.lane.b32.xlu0 %v1157_v32, %s952_s26 }
 0x2c4   :  { %434 = vrot.lane.b32.xlu1 %v1151_v29, %s953_s27 }
 0x2c6   :  { %436 = vrot.lane.b32.xlu0 %v1157_v32, %s953_s27  ;;  %s1228_s27 = sld [smem:[#allocation12 + $0x5]] }
 0x2c8   :  { %465 = vrot.lane.b32.xlu1 %v1151_v29, %s954_s29 }
 0x2ca   :  { %467 = vrot.lane.b32.xlu0 %v1157_v32, %s954_s29  ;;  %s1230_s29 = sld [smem:[#allocation12 + $0xe]] }
 0x2cc   :  { %520 = vrot.lane.b32.xlu1 %v1151_v29, %s955_s9 }
 0x2ce   :  { %522 = vrot.lane.b32.xlu0 %v1157_v32, %s955_s9 }
 0x2d0   :  { %551 = vrot.lane.b32.xlu1 %v1151_v29, %s956_s10  ;;  %v516_v42 = vstv %s1230_s29 }
 0x2d2   :  { %553 = vrot.lane.b32.xlu0 %v1157_v32, %s956_s10 }
 0x2d4   :  { %582 = vrot.lane.b32.xlu1 %v1151_v29, %s957_s3 }
 0x2d6   :  { %584 = vrot.lane.b32.xlu0 %v1157_v32, %s957_s3  ;;  %s1243_s3 = sld [smem:[#allocation12 + $0x6]] }
 0x2d8   :  { %613 = vrot.lane.b32.xlu1 %v1151_v29, %s958_s11 }
 0x2da   :  { %615 = vrot.lane.b32.xlu0 %v1157_v32, %s958_s11  ;;  %s1245_s11 = sld [smem:[#allocation12 + $0xf]] }
 0x32e   :  { %v373_v33 = vpop.permute.xlu1 %372 }
 0x330   :  { %v375_v36 = vpop.permute.xlu0 %374 }
 0x331   :  { %v377_v57 = vsel %vm376_vm6, %v373_v33, %v375_v36  ;;  %v378_v58 = vsel %vm376_vm6, %v375_v36, %v373_v33 }
 0x332   :  { %v404_v1 = vpop.permute.xlu1 %403  ;;  %v390_v11 = vmul.f32 %v383_v45, %v378_v58  ;;  %v391_v12 = vmul.f32 %v387_v50, %v377_v57  ;;  %v546_v57 = vstv %s1243_s3  ;;  %v547_v58 = vstv %s1245_s11 }
 0x333   :  { %v548_v10 = vsel %vm365_vm4, %v546_v57, %v547_v58  ;;  %v646_v57 = vstv %s1353_s6  ;;  %s960_s6 = smov [#allocation13]  }
 0x334   :  { %v406_v53 = vpop.permute.xlu0 %405  ;;  %v392_v33 = vmul.f32 %v390_v11, %v370_v49  ;;  %v393_v34 = vmul.f32 %v391_v12, %v370_v49  ;;  %s715_s5 = sshll.u32 %s960_s6, 4  ;;  %s716_s5 = int_to_ptr.vmem [resolvable:$true] %s715_s5 }
 0x335   :  { %v408_v55 = vsel %vm407_vm5, %v404_v1, %v406_v53  ;;  %v409_v56 = vsel %vm407_vm5, %v406_v53, %v404_v1  ;;  %v515_v1 = vstv %s1228_s27  ;;  %v566_v53 = vrot.slane %v757_v41, %v1121_v9  ;;  %s907_s13 = scalar_lea.vmem %s716_s5, 256  ;;  %p912_p8 = scmp.lt.s32.totalorder %s716_s5, %s716_s5 }
 0x336   :  { %v435_v59 = vpop.permute.xlu1 %434  ;;  %v421_v4 = vmul.f32 %v414_v51, %v409_v56  ;;  %v422_v5 = vmul.f32 %v418_v52, %v408_v55  ;;  %v562_v52 = vrot.slane %v757_v41, %v1118_v7  ;;  %p908_p7 = scmp.ne.s32.totalorder %s716_s5, %s907_s13  ;;  %p913_p9 = scmp.lt.s32.totalorder %s907_s13, %s907_s13 }
 0x338   :  { %v437_v6 = vpop.permute.xlu0 %436  ;;  %v423_v28 = vmul.f32 %v421_v4, %v400_v54  ;;  %v424_v29 = vmul.f32 %v422_v5, %v400_v54  ;;  %p914_p10 = por %p913_p9, %p912_p8 }
 0x339   :  { %v439_v13 = vsel %vm438_vm7, %v435_v59, %v437_v6  ;;  %v440_v14 = vsel %vm438_vm7, %v437_v6, %v435_v59  ;;  %v517_v59 = vsel %vm365_vm4, %v515_v1, %v516_v42 }
 0x33a   :  { %v452_v16 = vmul.f32 %v445_v60, %v440_v14  ;;  %v453_v17 = vmul.f32 %v449_v61, %v439_v13  ;;  %v466_v21 = vpop.permute.xlu1 %465  ;;  %v425_v44 = vadd.f32 %v423_v28, %v392_v33  ;;  %v426_v45 = vadd.f32 %v424_v29, %v393_v34  ;;  %p915_p11 = pnand %p914_p10, %p908_p7 }
 0x33b   :  { %v510_v60 = vmul.f32 %v508_v27, %v1207_v47  ;;  %v577_v61 = vstv %s1255_s12  ;;  %v609_v33 = vstv %s1280_s18 }
 0x33c   :  { %v468_v30 = vpop.permute.xlu0 %467  ;;  %v454_v36 = vmul.f32 %v452_v16, %v431_v24  ;;  %v455_v37 = vmul.f32 %v453_v17, %v431_v24  ;;  %v597_v16 = vrot.slane %v760_v63, %v1121_v9  ;;  %v579_v17 = vsel %vm365_vm4, %v577_v61, %v578_v62 }
 0x33d   :  { %v470_v35 = vsel %vm469_vm8, %v466_v21, %v468_v30  ;;  %v471_v32 = vsel %vm469_vm8, %v468_v30, %v466_v21  ;;  %v624_v21 = vrot.slane %v763_v8, %v1118_v7 }
 0x33e   :  { %v483_v38 = vmul.f32 %v476_v22, %v471_v32  ;;  %v484_v39 = vmul.f32 %v480_v23, %v470_v35  ;;  %v521_v40 = vpop.permute.xlu1 %520  ;;  %v456_v54 = vadd.f32 %v454_v36, %v425_v44  ;;  %v457_v55 = vadd.f32 %v455_v37, %v426_v45 }
 0x33f   :  { %v628_v22 = vrot.slane %v763_v8, %v1121_v9 }
 0x340   :  { %v485_v46 = vmul.f32 %v483_v38, %v462_v25  ;;  %v486_v48 = vmul.f32 %v484_v39, %v462_v25  ;;  %v523_v49 = vpop.permute.xlu0 %522 }
 0x341   :  { %v525_v50 = vsel %vm524_vm9, %v521_v40, %v523_v49  ;;  %v526_v51 = vsel %vm524_vm9, %v523_v49, %v521_v40 }
 0x342   :  { %v552_v56 = vpop.permute.xlu1 %551  ;;  %v487_v2 = vadd.f32 %v485_v46, %v456_v54  ;;  %v488_v3 = vadd.f32 %v486_v48, %v457_v55  ;;  %v538_v4 = vmul.f32 %v531_v31, %v525_v50  ;;  %v539_v5 = vmul.f32 %v535_v43, %v526_v51 }
 0x343   :  { %v608_v31 = vstv %s1278_s17 }
 0x344   :  { %v554_v6 = vpop.permute.xlu0 %553  ;;  %v511_v23 = vadd.f32 %v1252_v26, %v487_v2  ;;  %v512_v24 = vadd.f32 %v510_v60, %v488_v3  ;;  %v540_v25 = vmul.f32 %v538_v4, %v517_v59  ;;  %v541_v27 = vmul.f32 %v539_v5, %v517_v59 }
 0x345   :  { %v556_v47 = vsel %vm555_vm10, %v552_v56, %v554_v6  ;;  %v557_v11 = vsel %vm555_vm10, %v554_v6, %v552_v56  ;;  %v610_v1 = vsel %vm365_vm4, %v608_v31, %v609_v33  ;;  %v959_v5 = vmov 1966171168  }
 0x346   :  { %v569_v12 = vmul.f32 %v562_v52, %v556_v47  ;;  %v570_v13 = vmul.f32 %v566_v53, %v557_v11  ;;  %v583_v14 = vpop.permute.xlu1 %582  ;;  %v542_v37 = vadd.f32 %v540_v25, %v511_v23  ;;  %v543_v38 = vadd.f32 %v541_v27, %v512_v24 }
 0x347   :  { %v665_v6 = vunpack.c.l.s4 %v959_v5 }
 0x348   :  { %v585_v28 = vpop.permute.xlu0 %584  ;;  %v571_v34 = vmul.f32 %v569_v12, %v548_v10  ;;  %v572_v35 = vmul.f32 %v570_v13, %v548_v10 }
 0x349   :  { %v587_v29 = vsel %vm586_vm11, %v583_v14, %v585_v28  ;;  %v588_v30 = vsel %vm586_vm11, %v585_v28, %v583_v14  ;;  %v666_v8 = vunpack.c.0.s8 %v665_v6 }
 0x34a   :  { %v600_v32 = vmul.f32 %v593_v15, %v587_v29  ;;  %v601_v36 = vmul.f32 %v597_v16, %v588_v30  ;;  %v614_v40 = vpop.permute.xlu1 %613  ;;  %v573_v44 = vadd.f32 %v571_v34, %v542_v37  ;;  %v574_v45 = vadd.f32 %v572_v35, %v543_v38 }
 0x34b   :  { %v669_v47 = vsub.s32 %v666_v8, %v1098_v20 }
 0x34c   :  { %v602_v39 = vmul.f32 %v600_v32, %v579_v17  ;;  %v603_v26 = vmul.f32 %v601_v36, %v579_v17  ;;  %v616_v41 = vpop.permute.xlu0 %615 }
 0x34d   :  { %v618_v42 = vsel %vm617_vm12, %v614_v40, %v616_v41  ;;  %v619_v43 = vsel %vm617_vm12, %v616_v41, %v614_v40 }
 0x34e   :  { %v631_v46 = vmul.f32 %v624_v21, %v618_v42  ;;  %v632_v48 = vmul.f32 %v628_v22, %v619_v43  ;;  %v604_v49 = vadd.f32 %v602_v39, %v573_v44  ;;  %v605_v50 = vadd.f32 %v603_v26, %v574_v45 }
 0x350   :  { %v633_v51 = vmul.f32 %v631_v46, %v610_v1  ;;  %v634_v52 = vmul.f32 %v632_v48, %v610_v1 }
 0x352   :  { %v635_v53 = vadd.f32 %v633_v51, %v604_v49  ;;  %v636_v54 = vadd.f32 %v634_v52, %v605_v50 }
 0x354   :  { %v639_v55 = vrot.slane %v635_v53, 2  ;;  %v640_v56 = vrot.slane %v636_v54, 2 }
 0x356   :  { %v643_v58 = vadd.f32 %v639_v55, %v635_v53  ;;  %v644_v59 = vadd.f32 %v640_v56, %v636_v54 }
 0x358   :  { %v647_v19 = vadd.f32 %v646_v57, %v643_v58  ;;  %v648_v60 = vadd.f32 %v646_v57, %v644_v59 }
 0x35a   :  { %v764_v61 = vmul.f32 -1.442695, %v647_v19  ;;  %v765_v62 = vmul.f32 -1.442695, %v648_v60 }
 0x35c   :  { %801 = vpow2.f32 %v764_v61 }
 0x35d   :  { %803 = vpow2.f32 %v765_v62 }
 0x366   :  { %v802_v63 = vpop.eup %801 }
 0x367   :  { %v804_v2 = vpop.eup %803  ;;  %v655_v3 = vadd.f32 1.0, %v802_v63 }
 0x368   :  { %v656_v4 = vadd.f32 1.0, %v804_v2 }
 0x369   :  { %805 = vrcp.f32 %v655_v3 }
 0x36a   :  { %807 = vrcp.f32 %v656_v4 }
 0x373   :  { %v806_v10 = vpop.eup %805 }
 0x374   :  { %v808_v11 = vpop.eup %807 }
 0x375   :  { %v663_v12 = vcombine.low %v806_v10, %v808_v11 }
 0x377   :  { %v670_v13 = vrot.slane %v663_v12, %v669_v47 }
 0x379   :  { %v671_v14 = vcombine.high %v670_v13, %v670_v13  ;;  %v678_v15 = vrot.slane %v670_v13, %v669_v47 }
 0x37b   :  { %v685_v16 = vrot.slane %v671_v14, %v669_v47  ;;  %v689_v17 = vrot.slane %v678_v15, %v1118_v7  ;;  %v693_v21 = vrot.slane %v678_v15, %v1121_v9 }
 0x37d   :  { %v697_v22 = vrot.slane %v685_v16, %v1118_v7  ;;  %v701_v23 = vrot.slane %v685_v16, %v1121_v9  ;;  %v702_v24 = vcombine.low %v689_v17, %v693_v21 }
 0x37f   :  { %v703_v25 = vcombine.low %v697_v22, %v701_v23  ;;  %v706_v20 = vmul.f32 %v702_v24, %v1127_v18 }
 0x381   :  { %v707_v27 = vmul.f32 %v703_v25, %v1138_v0  ;;  %708 = vst [vmem:[#allocation13] sm:$0xff] %v706_v20 }
 0x383   :  { %709 = vst [vmem:[#allocation13 + $0x8] sm:$0xff] %v707_v27 }
 0x384   :  { %918 = shalt.err (!%p915_p11)
}
 0x385   :  { %s919_s23 = scalar_lea.hbm %s1355_s8, 256 }
 0x386   :  { %p920_p12 = scmp.ne.s32.totalorder %s1355_s8, %s919_s23  ;;  %p923_p13 = scmp.lt.u32.totalorder %s919_s23, %s1355_s8 }
 0x388   :  { %p925_p0 = pnand %p923_p13, %p920_p12 }
 0x38a   :  { %928 = shalt.err (!%p925_p0)
}
 0x38b   :  { %721 = dma.vmem_to_hbm [thread:$0]  %s716_s5, 256, %s1355_s8, [#allocation5], %s941_s2, %s941_s2, %s942_s28  }
 0x38c   :  { %937 = dma.done.wait [#allocation5], 256  }
 0x38d   :  { %938 = vsyncadd [#allocation5], 4294967040 }
 0x38e   :  { %725 = vsyncpa [#allocation4], 1 }
 0x38f   :  { %726 = vsyncpa [#allocation8], 1 }
 0x390   :  { %727 = vsyncpa [#allocation11], 1 }
 0x391   :  { %728 = vsyncpa [#allocation5], 1 }
 0x392   :  { %729 = vsyncpa [#allocation6], 1 }

</bundles_post_ra>
